<compile_context>
chip_gen: v7x
topology: tpu7x:2x2x1
jax: 0.10.0
libtpu: 0.0.40
codegen_flags: <defaults>
</compile_context>

<pallas_src>
import jax
import jax.numpy as jnp
from jax.experimental import pallas as pl
from jax.experimental.pallas import tpu as pltpu

_EPS = 1e-12  # clamp on soft cluster sizes to avoid 0/0 for empty clusters


def _wcss_kernel(lamb_ref, x_ref, p_ref, out_ref, s_acc, cnt_acc, t1_acc):
    """One (batch item, N-tile) per grid step; finalize writes weighted WCSS."""
    b = pl.program_id(0)
    n = pl.program_id(1)

    @pl.when(n == 0)
    def _init():
        s_acc[...] = jnp.zeros_like(s_acc)
        cnt_acc[...] = jnp.zeros_like(cnt_acc)
        t1_acc[...] = jnp.zeros_like(t1_acc)

    x = x_ref[0]                         # [TN, D]  (fed to MXU in native dtype)
    p = p_ref[0]                         # [TN, K]
    if x.dtype != p.dtype:               # trace-time: mixed dtypes -> f32 matmul
        x = x.astype(jnp.float32)
        p = p.astype(jnp.float32)

    # Centroid numerators: S += P^T @ X  (single MXU matmul, f32 accumulation).
    s_acc[...] += jax.lax.dot_general(
        p, x, (((0,), (0,)), ((), ())), preferred_element_type=jnp.float32)

    # Soft cluster sizes fused onto the MXU: counts += P^T @ 1 -> [K, 1]
    # (no cross-sublane XLU reduce, no [1,K]->[K,1] transpose needed later).
    ones_col = jnp.ones((p.shape[0], 1), dtype=p.dtype)
    cnt_acc[...] += jax.lax.dot_general(
        p, ones_col, (((0,), (0,)), ((), ())), preferred_element_type=jnp.float32)

    # term1 partial: sum_n (sum_k P[n,k]) * ||x_n||^2   (cheap VPU/XLU work)
    xf = x.astype(jnp.float32)
    pf = p.astype(jnp.float32)
    x2 = jnp.sum(xf * xf, axis=1, keepdims=True)              # [TN, 1]
    rp = jnp.sum(pf, axis=1, keepdims=True)                   # [TN, 1]
    t1_acc[...] += jnp.sum(rp * x2, axis=(0, 1), keepdims=True)   # [1, 1]

    @pl.when(n == pl.num_programs(1) - 1)
    def _finalize():
        s = s_acc[...]                                         # [K, D]
        cnt = jnp.maximum(cnt_acc[...], _EPS)                  # [K, 1]
        s2 = jnp.sum(s * s, axis=1, keepdims=True)             # [K, 1]
        term2 = jnp.sum(s2 / cnt, axis=(0, 1), keepdims=True)  # [1, 1]
        wcss = jnp.maximum(t1_acc[...] - term2, 0.0)           # [1, 1]
        out_ref[0] = lamb_ref[b] * wcss                        # (1,1) view of block


def _pick_n_tile(N, D, K, x_itemsize, p_itemsize):
    """N tile: large enough to amortize per-step overhead, small enough that the
    double-buffered X+P tiles stay well inside scoped VMEM on v5e/v6e/v7x."""
    row_bytes = D * x_itemsize + K * p_itemsize
    budget = 8 << 20                       # per-buffer budget (x2 double-buffer)
    tn = min(512, max(8, budget // max(row_bytes, 1)))
    tn = max(8, (tn // 8) * 8)             # keep sublane-aligned
    if tn >= N:
        return int(N)                      # single full-extent tile (always legal)
    return int(tn)


def cluster_loss(Lamb, Attributes, Probabilities, cluster_labels=None):
    """JAX/Pallas equivalent of ClusterLoss.forward.

    Returns (loss, weighted) where loss is a shape-(1,) float32 array (matching
    torch.Tensor([0]) accumulation) and weighted is the [B] array of per-item
    Lamb[i]*WCSS_i values.  The python loss_list (host floats) should be built
    outside the hot path so this wrapper stays jit-compatible.
    """
    B, N, D = Attributes.shape
    K = Probabilities.shape[-1]
    # TODO(synk): reference derives k = len(torch.unique(labels)) per item;
    #             here the cluster count is carried by Probabilities' width K.

    x_isz = jnp.dtype(Attributes.dtype).itemsize
    p_isz = jnp.dtype(Probabilities.dtype).itemsize
    tn = _pick_n_tile(N, D, K, x_isz, p_isz)
    n_pad = ((N + tn - 1) // tn) * tn
    if n_pad != N:
        # Zero-probability padded rows contribute nothing to S, counts or term1.
        pad = ((0, 0), (0, n_pad - N), (0, 0))
        Attributes = jnp.pad(Attributes, pad)
        Probabilities = jnp.pad(Probabilities, pad)
    n_tiles = n_pad // tn

    tile_bytes = tn * (D * x_isz + K * p_isz)
    scratch_bytes = 4 * (K * max(D, 128) + 2 * 128)
    vmem_limit = int(min(max(2 * tile_bytes + scratch_bytes + (2 << 20), 16 << 20),
                         32 << 20))

    weighted = pl.pallas_call(
        _wcss_kernel,
        out_shape=jax.ShapeDtypeStruct((B, 1, 1), jnp.float32),
        grid=(B, n_tiles),
        in_specs=[
            pl.BlockSpec(memory_space=pltpu.MemorySpace.SMEM),        # Lamb [B]
            pl.BlockSpec((1, tn, D), lambda b, n: (b, n, 0)),         # X tile
            pl.BlockSpec((1, tn, K), lambda b, n: (b, n, 0)),         # P tile
        ],
        out_specs=pl.BlockSpec((1, 1, 1), lambda b, n: (b, 0, 0)),
        scratch_shapes=[
            pltpu.VMEM((K, D), jnp.float32),   # S = P^T X accumulator
            pltpu.VMEM((K, 1), jnp.float32),   # soft cluster sizes
            pltpu.VMEM((1, 1), jnp.float32),   # sum_n rowsum(P) * ||x||^2
        ],
        compiler_params=pltpu.CompilerParams(
            dimension_semantics=("parallel", "arbitrary"),
            vmem_limit_bytes=vmem_limit),
    )(Lamb.astype(jnp.float32), Attributes, Probabilities)

    weighted = weighted[:, 0, 0]                 # [B] weighted per-item WCSS
    loss = jnp.sum(weighted).reshape(1)          # shape (1,) like torch.Tensor([0])
    return loss, weighted


def _reference_cluster_loss(Lamb, Attributes, Probabilities):
    """Pure-JAX reference (direct centroid-difference formula)."""
    counts = jnp.sum(Probabilities, axis=1)                               # [B, K]
    sums = jnp.einsum('bnk,bnd->bkd', Probabilities, Attributes)          # [B, K, D]
    centroids = sums / counts[..., None]                                  # [B, K, D]
    diff = Attributes[:, :, None, :] - centroids[:, None, :, :]           # [B, N, K, D]
    dist2 = jnp.sum(diff * diff, axis=-1)                                 # [B, N, K]
    wcss = jnp.sum(Probabilities * dist2, axis=(1, 2))                    # [B]
    weighted = Lamb * wcss
    return jnp.sum(weighted).reshape(1), weighted


if __name__ == "__main__":
    key = jax.random.PRNGKey(0)
    B, N, D, K = 2, 16, 32, 4

    k1, k2, k3 = jax.random.split(key, 3)
    attributes = jax.random.normal(k1, (B, N, D), dtype=jnp.float32)
    probabilities = jax.nn.softmax(
        jax.random.normal(k2, (B, N, K), dtype=jnp.float32), axis=-1)
    cluster_labels = jax.random.randint(k3, (B, N), 0, K, dtype=jnp.int32)
    lamb = jnp.array([0.5, 1.5], dtype=jnp.float32)

    loss, weighted = jax.jit(cluster_loss)(lamb, attributes, probabilities,
                                           cluster_labels)
    loss = jax.block_until_ready(loss)

    ref_loss, ref_weighted = _reference_cluster_loss(lamb, attributes, probabilities)
    assert jnp.allclose(loss, ref_loss, rtol=1e-4, atol=1e-3), (loss, ref_loss)
    assert jnp.allclose(weighted, ref_weighted, rtol=1e-4, atol=1e-3), (
        weighted, ref_weighted)

    # torch-style loss_list is built off the hot path (host sync only here).
    loss_list = [float(v) for v in jax.device_get(weighted)]
    assert len(loss_list) == B

    print("KERNEL_OK")
</pallas_src>

<mosaic_0001>
module attributes {stable_mosaic.version = 11 : i64} {
  func.func @_wcss_kernel(%arg0: i32, %arg1: i32, %arg2: memref<2xf32, #tpu.memory_space<smem>>, %arg3: memref<1x16x32xf32, #tpu.memory_space<vmem>>, %arg4: memref<1x16x4xf32, #tpu.memory_space<vmem>>, %arg5: memref<1x1x1xf32, #tpu.memory_space<vmem>>, %arg6: memref<4x32xf32, #tpu.memory_space<vmem>>, %arg7: memref<4x1xf32, #tpu.memory_space<vmem>>, %arg8: memref<1x1xf32, #tpu.memory_space<vmem>>) attributes {dimension_semantics = [#tpu.dimension_semantics<parallel>, #tpu.dimension_semantics<arbitrary>], iteration_bounds = array<i64: 2, 1>, scalar_prefetch = 0 : i64, scratch_operands = 3 : i64, tpu.core_type = #tpu.core_type<tc>, window_params = [{transform_indices = @transform_0, window_bounds = array<i64: 2>}, {transform_indices = @transform_1, window_bounds = array<i64: 1, 16, 32>}, {transform_indices = @transform_2, window_bounds = array<i64: 1, 16, 4>}, {transform_indices = @transform_3, window_bounds = array<i64: 1, 1, 1>}]} {
    %c0_i32 = arith.constant 0 : i32
    %0 = arith.cmpi eq, %arg1, %c0_i32 : i32
    %1 = arith.extui %0 : i1 to i32
    %c0_i32_0 = arith.constant 0 : i32
    %2 = arith.cmpi ne, %1, %c0_i32_0 : i32
    scf.if %2 {
      %cst_25 = arith.constant 0.000000e+00 : f32
      %33 = vector.broadcast %cst_25 : f32 to vector<4x32xf32>
      %c0_26 = arith.constant 0 : index
      %c0_27 = arith.constant 0 : index
      %34 = vector.load %arg6[%c0_26, %c0_27] : memref<4x32xf32, #tpu.memory_space<vmem>>, vector<4x32xf32>
      tpu.vector_store %arg6[%c0_26, %c0_27], %33 {strides = array<i32>} : memref<4x32xf32, #tpu.memory_space<vmem>>, vector<4x32xf32>,
      %cst_28 = arith.constant 0.000000e+00 : f32
      %35 = vector.broadcast %cst_28 : f32 to vector<4x1xf32>
      %c0_29 = arith.constant 0 : index
      %c0_30 = arith.constant 0 : index
      %36 = vector.load %arg7[%c0_29, %c0_30] : memref<4x1xf32, #tpu.memory_space<vmem>>, vector<4x1xf32>
      tpu.vector_store %arg7[%c0_29, %c0_30], %35 {strides = array<i32>} : memref<4x1xf32, #tpu.memory_space<vmem>>, vector<4x1xf32>,
      %cst_31 = arith.constant 0.000000e+00 : f32
      %37 = vector.broadcast %cst_31 : f32 to vector<1x1xf32>
      %c0_32 = arith.constant 0 : index
      %c0_33 = arith.constant 0 : index
      %38 = vector.load %arg8[%c0_32, %c0_33] : memref<1x1xf32, #tpu.memory_space<vmem>>, vector<1x1xf32>
      tpu.vector_store %arg8[%c0_32, %c0_33], %37 {strides = array<i32>} : memref<1x1xf32, #tpu.memory_space<vmem>>, vector<1x1xf32>,
    } else {
    }
    %c0 = arith.constant 0 : index
    %c0_1 = arith.constant 0 : index
    %c0_2 = arith.constant 0 : index
    %3 = vector.load %arg3[%c0, %c0_1, %c0_2] : memref<1x16x32xf32, #tpu.memory_space<vmem>>, vector<1x16x32xf32>
    %4 = vector.shape_cast %3 : vector<1x16x32xf32> to vector<16x32xf32>
    %c0_3 = arith.constant 0 : index
    %c0_4 = arith.constant 0 : index
    %c0_5 = arith.constant 0 : index
    %5 = vector.load %arg4[%c0_3, %c0_4, %c0_5] : memref<1x16x4xf32, #tpu.memory_space<vmem>>, vector<1x16x4xf32>
    %6 = vector.shape_cast %5 : vector<1x16x4xf32> to vector<16x4xf32>
    %c0_6 = arith.constant 0 : index
    %c0_7 = arith.constant 0 : index
    %7 = vector.load %arg6[%c0_6, %c0_7] : memref<4x32xf32, #tpu.memory_space<vmem>>, vector<4x32xf32>
    %cst = arith.constant dense<0.000000e+00> : vector<4x32xf32>
    %8 = tpu.matmul %6, %4, %cst {dimension_numbers = #tpu.dot_dimension_numbers<[0], [0], [1], [1], [0, 1, 1, 1], [], []>} : vector<16x4xf32>, vector<16x32xf32>, vector<4x32xf32> -> vector<4x32xf32>
    %9 = arith.addf %7, %8 : vector<4x32xf32>
    %c0_8 = arith.constant 0 : index
    %c0_9 = arith.constant 0 : index
    %10 = vector.load %arg6[%c0_8, %c0_9] : memref<4x32xf32, #tpu.memory_space<vmem>>, vector<4x32xf32>
    tpu.vector_store %arg6[%c0_8, %c0_9], %9 {strides = array<i32>} : memref<4x32xf32, #tpu.memory_space<vmem>>, vector<4x32xf32>,
    %cst_10 = arith.constant 1.000000e+00 : f32
    %11 = vector.broadcast %cst_10 : f32 to vector<16x1xf32>
    %c0_11 = arith.constant 0 : index
    %c0_12 = arith.constant 0 : index
    %12 = vector.load %arg7[%c0_11, %c0_12] : memref<4x1xf32, #tpu.memory_space<vmem>>, vector<4x1xf32>
    %cst_13 = arith.constant dense<0.000000e+00> : vector<4x1xf32>
    %13 = tpu.matmul %6, %11, %cst_13 {dimension_numbers = #tpu.dot_dimension_numbers<[0], [0], [1], [1], [0, 1, 1, 1], [], []>} : vector<16x4xf32>, vector<16x1xf32>, vector<4x1xf32> -> vector<4x1xf32>
    %14 = arith.addf %12, %13 : vector<4x1xf32>
    %c0_14 = arith.constant 0 : index
    %c0_15 = arith.constant 0 : index
    %15 = vector.load %arg7[%c0_14, %c0_15] : memref<4x1xf32, #tpu.memory_space<vmem>>, vector<4x1xf32>
    tpu.vector_store %arg7[%c0_14, %c0_15], %14 {strides = array<i32>} : memref<4x1xf32, #tpu.memory_space<vmem>>, vector<4x1xf32>,
    %16 = arith.mulf %4, %4 : vector<16x32xf32>
    %cst_16 = arith.constant dense<0.000000e+00> : vector<16xf32>
    %17 = vector.multi_reduction <add>, %16, %cst_16 [1] : vector<16x32xf32> to vector<16xf32>
    %18 = vector.shape_cast %17 : vector<16xf32> to vector<16x1xf32>
    %cst_17 = arith.constant dense<0.000000e+00> : vector<16xf32>
    %19 = vector.multi_reduction <add>, %6, %cst_17 [1] : vector<16x4xf32> to vector<16xf32>
    %20 = vector.shape_cast %19 : vector<16xf32> to vector<16x1xf32>
    %c0_18 = arith.constant 0 : index
    %c0_19 = arith.constant 0 : index
    %21 = vector.load %arg8[%c0_18, %c0_19] : memref<1x1xf32, #tpu.memory_space<vmem>>, vector<1x1xf32>
    %22 = arith.mulf %20, %18 : vector<16x1xf32>
    %23 = vector.shape_cast %22 : vector<16x1xf32> to vector<1x16x1xf32>
    %cst_20 = arith.constant dense<0.000000e+00> : vector<1xf32>
    %24 = vector.multi_reduction <add>, %23, %cst_20 [1, 2] : vector<1x16x1xf32> to vector<1xf32>
    %25 = vector.shape_cast %24 : vector<1xf32> to vector<1x1x1xf32>
    %26 = vector.extract %25[0, 0, 0] : f32 from vector<1x1x1xf32>
    %27 = vector.broadcast %26 : f32 to vector<1x1xf32>
    %28 = arith.addf %21, %27 : vector<1x1xf32>
    %c0_21 = arith.constant 0 : index
    %c0_22 = arith.constant 0 : index
    %29 = vector.load %arg8[%c0_21, %c0_22] : memref<1x1xf32, #tpu.memory_space<vmem>>, vector<1x1xf32>
    tpu.vector_store %arg8[%c0_21, %c0_22], %28 {strides = array<i32>} : memref<1x1xf32, #tpu.memory_space<vmem>>, vector<1x1xf32>,
    %c0_i32_23 = arith.constant 0 : i32
    %30 = arith.cmpi eq, %arg1, %c0_i32_23 : i32
    %31 = arith.extui %30 : i1 to i32
    %c0_i32_24 = arith.constant 0 : i32
    %32 = arith.cmpi ne, %31, %c0_i32_24 : i32
    scf.if %32 {
      %c0_25 = arith.constant 0 : index
      %c0_26 = arith.constant 0 : index
      %33 = vector.load %arg6[%c0_25, %c0_26] : memref<4x32xf32, #tpu.memory_space<vmem>>, vector<4x32xf32>
      %c0_27 = arith.constant 0 : index
      %c0_28 = arith.constant 0 : index
      %34 = vector.load %arg7[%c0_27, %c0_28] : memref<4x1xf32, #tpu.memory_space<vmem>>, vector<4x1xf32>
      %cst_29 = arith.constant 9.99999996E-13 : f32
      %35 = vector.broadcast %cst_29 : f32 to vector<4x1xf32>
      %36 = arith.maximumf %34, %35 : vector<4x1xf32>
      %37 = arith.mulf %33, %33 : vector<4x32xf32>
      %cst_30 = arith.constant dense<0.000000e+00> : vector<4xf32>
      %38 = vector.multi_reduction <add>, %37, %cst_30 [1] : vector<4x32xf32> to vector<4xf32>
      %39 = vector.shape_cast %38 : vector<4xf32> to vector<4x1xf32>
      %40 = arith.divf %39, %36 : vector<4x1xf32>
      %41 = vector.shape_cast %40 : vector<4x1xf32> to vector<1x4x1xf32>
      %cst_31 = arith.constant dense<0.000000e+00> : vector<1xf32>
      %42 = vector.multi_reduction <add>, %41, %cst_31 [1, 2] : vector<1x4x1xf32> to vector<1xf32>
      %43 = vector.shape_cast %42 : vector<1xf32> to vector<1x1x1xf32>
      %44 = vector.extract %43[0, 0, 0] : f32 from vector<1x1x1xf32>
      %45 = vector.broadcast %44 : f32 to vector<1x1xf32>
      %c0_32 = arith.constant 0 : index
      %c0_33 = arith.constant 0 : index
      %46 = vector.load %arg8[%c0_32, %c0_33] : memref<1x1xf32, #tpu.memory_space<vmem>>, vector<1x1xf32>
      %47 = arith.subf %46, %45 : vector<1x1xf32>
      %cst_34 = arith.constant 0.000000e+00 : f32
      %48 = vector.broadcast %cst_34 : f32 to vector<1x1xf32>
      %49 = arith.maximumf %47, %48 : vector<1x1xf32>
      %50 = arith.index_cast %arg0 : i32 to index
      %51 = memref.load %arg2[%50] : memref<2xf32, #tpu.memory_space<smem>>
      %52 = vector.broadcast %51 : f32 to vector<1x1xf32>
      %53 = arith.mulf %52, %49 : vector<1x1xf32>
      %c0_35 = arith.constant 0 : index
      %c0_36 = arith.constant 0 : index
      %c0_37 = arith.constant 0 : index
      %54 = vector.load %arg5[%c0_35, %c0_36, %c0_37] : memref<1x1x1xf32, #tpu.memory_space<vmem>>, vector<1x1x1xf32>
      %55 = vector.shape_cast %54 : vector<1x1x1xf32> to vector<1x1xf32>
      %56 = vector.shape_cast %53 : vector<1x1xf32> to vector<1x1x1xf32>
      tpu.vector_store %arg5[%c0_35, %c0_36, %c0_37], %56 {strides = array<i32>} : memref<1x1x1xf32, #tpu.memory_space<vmem>>, vector<1x1x1xf32>,
    } else {
    }
    return
  }
  func.func @transform_0(%arg0: i32, %arg1: i32) -> i32 {
    %c0_i32 = arith.constant 0 : i32
    %c0_i32_0 = arith.constant 0 : i32
    return %c0_i32 : i32
  }
  func.func @transform_1(%arg0: i32, %arg1: i32) -> (i32, i32, i32) {
    %c0_i32 = arith.constant 0 : i32
    %c0_i32_0 = arith.constant 0 : i32
    return %arg0, %arg1, %c0_i32 : i32, i32, i32
  }
  func.func @transform_2(%arg0: i32, %arg1: i32) -> (i32, i32, i32) {
    %c0_i32 = arith.constant 0 : i32
    %c0_i32_0 = arith.constant 0 : i32
    return %arg0, %arg1, %c0_i32 : i32, i32, i32
  }
  func.func @transform_3(%arg0: i32, %arg1: i32) -> (i32, i32, i32) {
    %c0_i32 = arith.constant 0 : i32
    %c0_i32_0 = arith.constant 0 : i32
    %c0_i32_1 = arith.constant 0 : i32
    return %arg0, %c0_i32, %c0_i32_0 : i32, i32, i32
  }
}

</mosaic_0001>

<bundles_post_ra>
// kernel: cluster_loss.1
= control target key start
LH: loop header
LB: loop body
LE: loop exit
PB: predicated region body
PF: predicated region fallthrough
CT: control target
= control target key end

     0   :  { %8 = vsyncpa [#allocation6], 0  ;;  %s756_s12 = smov 0   ;;  %s758_s13 = smov 0   ;;  %s837_s0 = inlined_call_operand.vmem [shape: f32[2], index: 0, kind: input, shape index: {}]   ;;  %s838_s1 = inlined_call_operand.vmem [shape: f32[2,16,32], index: 1, kind: input, shape index: {}]   ;;  %s839_s2 = inlined_call_operand.vmem [shape: f32[2,16,4], index: 2, kind: input, shape index: {}]   ;;  %s840_s3 = inlined_call_operand.vmem [shape: f32[2,1,1], index: 3, kind: output, shape index: {}]  }
   0x1   :  { %s760_s14 = smov 0  }
   0x2 LB: > { %s601_s15 = sadd.s32 4294967295, %s729_s14   ;;  %s26_s16 = sadd.s32 1, %s725_s13  ;;  %s729_s14 = sphi %s760_s14, %s14_s14   ;;  %s725_s13 = sphi %s758_s13, %s844_s13   ;;  %s721_s12 = sphi %s756_s12, %s843_s12  }
   0x3   : > { %p28_p0 = scmp.ge.s32.totalorder %s26_s16, 2  ;;  %p603_p1 = scmp.ge.s32.totalorder %s729_s14, 1 }
   0x4   : > { %p134_p2 = scmp.lt.s32.totalorder %s729_s14, 3  ;;  %p781_p4 = scmp.eq.s32.totalorder %s601_s15, 0 }
   0x5   : > { %s846_s16 = smov (%p28_p0, %s26_s16), 0  ;;  %s147_s21 = sshll.u32 %s837_s0, 4  ;;  %s148_s21 = int_to_ptr.vmem [resolvable:$true] %s147_s21 }
   0x6   : > { %p777_p3 = pnand %p603_p1, %p134_p2  ;;  %s688_s22 = scalar_lea.vmem %s148_s21, 16 }
   0x7   : > { %p689_p7 = scmp.ne.s32.totalorder %s148_s21, %s688_s22  ;;  %p696_p11 = scmp.lt.s32.totalorder %s148_s21, %s148_s21 }
   0x8   : > { %p651_p5 = pneg %p777_p3  ;;  %p697_p12 = scmp.lt.s32.totalorder %s688_s22, %s688_s22 }
   0xa   : > { %p652_p6 = pnand %p781_p4, %p651_p5  ;;  %p698_p13 = por %p697_p12, %p696_p11 }
   0xc   : > { %p690_p8 = pneg %p652_p6 }
   0xe   : > { %p691_p9 = pnand %p690_p8, %p689_p7 }
  0x10   : > { %p692_p10 = pneg %p691_p9 }
  0x12   : > { %p699_p0 = pnand %p698_p13, %p692_p10 }
  0x14   : > { %702 = shalt.err (!%p699_p0)
}
  0x15   : > { %s731_s23 = smov [#allocation5]   ;;  %186 = sbr.rel (%p777_p3) target bundleno = 749 (0x2ed), region = 32 }
  0x16   : > { %654 = dma.vmem_to_smem (!%p652_p6), %s148_s21, 16, %s731_s23, [#allocation6]  }
  0x1c   : > { %716 = dma.done.wait (%p781_p4), [#allocation6], 16  }
  0x1d   : > { %718 = vsyncadd (%p781_p4), [#allocation6], 4294967280 }
  0x1e   : > { %192 = sfence }
  0x1f   : > { %p223_p1 = scmp.lt.s32.totalorder %s721_s12, 1  ;;  %v732_v0 = vmov 0.0|0.0   ;;  %v733_v1 = vmov 1.0|1.0   ;;  %vm734_vm0 = vmmov 0   ;;  %v735_v2 = vmov 0.0  }
  0x20   : > { %638 = vmatprep.subr.bf16.mxu0 %v732_v0  ;;  %641 = vmatprep.subr.bf16.mxu1 %v732_v0  ;;  %vm445_vm1 = vcmask 261120   ;;  %vm249_vm2 = vcmask 257024   ;;  %vm452_vm3 = vcmask 31744   ;;  %vm292_vm4 = vcmask 130048   ;;  %s505_s6 = sld [smem:[#allocation5 + %s721_s12]] }
  0x21   : > { %s800_s24 = scalar_select %p223_p1, %s721_s12, 1  ;;  %642 = vmatpush3.bf16.msra.mxu1 %v733_v1  ;;  %628 = vmatprep.mubr.msk.f32.mxu0 %vm734_vm0, %v735_v2  ;;  %250 = vst.msk [vmem:[#allocation2] sm:$0xf] %vm249_vm2, %v735_v2  ;;  %vm251_vm5 = vcmask 3072   ;;  %vm462_vm6 = vcmask 7168   ;;  %vm253_vm7 = vcmask 0  }
  0x22   : > { %635 = vmatprep.mubr.msk.f32.mxu1 %vm734_vm0, %v735_v2  ;;  %252 = vst.msk [vmem:[#allocation3] sm:$0xf] %vm251_vm5, %v735_v2 }
  0x23   : > { %s616_s25 = sshll.u32 %s800_s24, 4  ;;  %254 = vst.msk [vmem:[#allocation4] sm:$0x1] %vm253_vm7, %v735_v2  ;;  %s244_s10 = scalar_lea.vmem %s840_s3, %s800_s24 }
  0x24   : > { %s240_s28 = scalar_lea.vmem %s839_s2, %s616_s25  ;;  %s230_s4 = scalar_lea.vmem %s838_s1, %s616_s25 }
  0x25   : > { %v257_v3 = vld [vmem:[%s240_s28] sm:$0xff]  ;;  %v256_v5 = vld [vmem:[%s230_s4 + $0x8] sm:$0xff] }
  0x26   : > { %v255_v4 = vld [vmem:[%s230_s4] sm:$0xff]  ;;  %260 = vxpose.xlu0.b32.start [1/2] (short) (narrow) %v257_v3, 8  ;;  %v258_v6 = vld [vmem:[%s240_s28 + $0x8] sm:$0xff]  ;;  %v444_v9 = vmul.f32 %v256_v5, %v256_v5  ;;  %v453_v13 = vsel %vm452_vm3, %v257_v3, 0.0  ;;  %v506_v61 = vstv %s505_s6 }
  0x27   : > { %v639_v7 = vpack.c.bf16 %v256_v5, %v255_v4  ;;  %v443_v8 = vmul.f32 %v255_v4, %v255_v4  ;;  %v456_v12 = vsel %vm452_vm3, %v258_v6, 0.0 }
  0x28   : > { %v449_v11 = vsel %vm445_vm1, %v444_v9, 0.0  ;;  %v259_v16 = vld [vmem:[#allocation2] sm:$0xf] }
  0x29   : > { %640 = vmatpush3.bf16.msra.mxu0 %v639_v7  ;;  %v446_v10 = vsel %vm445_vm1, %v443_v8, 0.0  ;;  %v369_v17 = vld [vmem:[#allocation3] sm:$0xf] }
  0x2a   : > { %261 = vxpose.xlu0.b32.end [2/2] (short) (narrow) %v258_v6, 8  ;;  %447 = vadd.xlane.f32.xlu1 %v446_v10  ;;  %v459_v48 = vld [vmem:[#allocation4] sm:$0x1] }
  0x2e   : > { %450 = vadd.xlane.f32.xlu1 %v449_v11 }
  0x32   : > { %457 = vadd.xlane.f32.xlu1 %v456_v12 }
  0x57   : > { %454 = vadd.xlane.f32.xlu0 %v453_v13 }
  0xa6   : > { %v276_v14 = vpop.trf.xlu0 }
  0xa7   : > { %629 = vmatmul.mubr.msk.f32.vlgmr.msra.gmra.mrb[0].mxu0 %vm292_vm4, %v276_v14  ;;  %636 = vmatmul.mubr.msk.f32.vlgmr.msra.gmra.mrb[0].mxu1 %vm292_vm4, %v276_v14 }
  0xb7   : > { %v448_v15 = vpop.xlane.xlu1 %447 }
  0xbb   : > { %v451_v18 = vpop.xlane.xlu1 %450 }
  0xbf   : > { %v458_v26 = vpop.xlane.xlu1 %457 }
  0xc0   : > { %v461_v28 = vmul.f32 %v458_v26, %v451_v18 }
  0xc2   : > { %v464_v32 = vsel %vm462_vm6, %v461_v28, 0.0 }
  0xe4   : > { %v455_v25 = vpop.xlane.xlu0 %454 }
  0xe5   : > { %v460_v27 = vmul.f32 %v455_v25, %v448_v15 }
  0xe7   : > { %v463_v31 = vsel %vm462_vm6, %v460_v27, 0.0 }
  0xe8   : > { %v465_v34 = vadd.f32 %v464_v32, %v463_v31 }
 0x17a   : > { %v362_v19 = vpop.f32.mrb[0].mxu0  ;;  %v436_v20 = vpop.f32.mrb[0].mxu1 }
 0x17b   : > { %v366_v21 = vadd.f32 %v362_v19, %v259_v16  ;;  %v440_v22 = vadd.f32 %v436_v20, %v369_v17  ;;  %v630_v23 = vpop.f32.mrb[1].mxu0  ;;  %v637_v24 = vpop.f32.mrb[1].mxu1 }
 0x17d   : > { %368 = vst.msk [vmem:[#allocation2] sm:$0xf] %vm249_vm2, %v366_v21 }
 0x17e   : > { %442 = vst.msk [vmem:[#allocation3] sm:$0xf] %vm251_vm5, %v440_v22 }
 0x184   : > { %v482_v29 = vld [vmem:[#allocation2] sm:$0xf] }
 0x185   : > { %v485_v30 = vmul.f32 %v482_v29, %v482_v29  ;;  %v483_v35 = vld [vmem:[#allocation3] sm:$0xf] }
 0x186   : > { %v484_v36 = vmax.f32 %v483_v35, 1e-12 }
 0x187   : > { %v486_v33 = vsel %vm249_vm2, %v485_v30, 0.0 }
 0x188   : > { %487 = vadd.xlane.f32.xlu1 %v486_v33  ;;  %686 = vrcp.f32 %v484_v36 }
 0x18c   : > { %466 = vadd.xlane.f32.xlu1 %v465_v34 }
 0x192   : > { %v687_v37 = vpop.eup %686 }
 0x215   : > { %v488_v38 = vpop.xlane.xlu1 %487 }
 0x216   : > { %v490_v39 = vmul.f32 %v687_v37, %v488_v38 }
 0x218   : > { %v491_v40 = vsel %vm251_vm5, %v490_v39, 0.0 }
 0x219   : > { %492 = vadd.xlane.f32.xlu1 %v491_v40  ;;  %v467_v41 = vpop.xlane.xlu1 %466 }
 0x21a   : > { %v468_v42 = vrot.slane %v467_v41, 4 }
 0x21c   : > { %v469_v43 = vadd.f32 %v468_v42, %v467_v41 }
 0x21e   : > { %v470_v44 = vrot.slane %v469_v43, 2 }
 0x220   : > { %v471_v45 = vadd.f32 %v470_v44, %v469_v43 }
 0x222   : > { %v472_v46 = vrot.slane %v471_v45, 1 }
 0x224   : > { %v473_v47 = vadd.f32 %v472_v46, %v471_v45 }
 0x226   : > { %643 = vpush %v473_v47 }
 0x257   : > { %s644_s5 = spop %643 }
 0x258   : > { %v475_v49 = vstv %s644_s5 }
 0x259   : > { %v476_v50 = vadd.f32 %v475_v49, %v459_v48 }
 0x25b   : > { %478 = vst.msk [vmem:[#allocation4] sm:$0x1] %vm253_vm7, %v476_v50 }
 0x262   : > { %v502_v59 = vld [vmem:[#allocation4] sm:$0x1] }
 0x2a6   : > { %v493_v51 = vpop.xlane.xlu1 %492 }
 0x2a7   : > { %v494_v52 = vrot.slane %v493_v51, 4 }
 0x2a9   : > { %v495_v53 = vadd.f32 %v494_v52, %v493_v51 }
 0x2ab   : > { %v496_v54 = vrot.slane %v495_v53, 2 }
 0x2ad   : > { %v497_v55 = vadd.f32 %v496_v54, %v495_v53 }
 0x2af   : > { %v498_v56 = vrot.slane %v497_v55, 1 }
 0x2b1   : > { %v499_v57 = vadd.f32 %v498_v56, %v497_v55 }
 0x2b3   : > { %645 = vpush %v499_v57 }
 0x2e4   : > { %s646_s7 = spop %645 }
 0x2e5   : > { %v501_v58 = vstv %s646_s7 }
 0x2e6   : > { %v503_v60 = vsub.f32 %v502_v59, %v501_v58 }
 0x2e8   : > { %v504_v62 = vmax.f32 %v503_v60, 0.0 }
 0x2ea   : > { %v507_v63 = vmul.f32 %v506_v61, %v504_v62 }
 0x2ec   : > { %508 = vst.msk [vmem:[%s244_s10] sm:$0x1] %vm253_vm7, %v507_v63 }
 0x2ed PF: > { %s14_s14 = sadd.s32 1, %s729_s14   ;;  %s843_s12 = smov %s725_s13 }
 0x2ee   : > { %p11_p2 = scmp.ge.s32.totalorder %s14_s14, 4   ;;  %s844_s13 = smov %s846_s16 }
 0x2f0   :  { %13 = sbr.rel (!%p11_p2) target bundleno = 2 (0x2), region = 78 }
 0x2f7   :  { %526 = vsyncpa [#allocation6], 1 }
 0x2f8   :  { %528 = vsyncpa [#allocation6 + $0x1], 1 }

</bundles_post_ra>
